<compile_context>
chip_gen: v5e
topology: v5e:2x2
jax: 0.10.0
libtpu: 0.0.40
codegen_flags: <defaults>
</compile_context>

<pallas_src>
import functools

import jax
import jax.numpy as jnp
from jax.experimental import pallas as pl
from jax.experimental.pallas import tpu as pltpu


# --------------------------------------------------------------------------
# Kernels
# --------------------------------------------------------------------------
def _conv_core(a, w_ref, y_ref, psum_ref, m2_ref, H, W):
    """3x3 same-conv of one image in channels-major layout + BN partials.

    a       : [cin, H*W]    f32 activation (lane axis = flattened spatial)
    w_ref   : [cout, 9*cin] repacked weights, K ordered (ky, kx, ci)
    y_ref   : [1, cout, H*W] raw conv output (lane-dense store)
    psum_ref: [1, cout, 1]   per-image per-channel sum
    m2_ref  : [1, cout, 1]   per-image per-channel centered sum of squares
    """
    cin, hw = a.shape
    pad = W + 1
    zero = jnp.zeros((cin, pad), jnp.float32)
    az = jnp.concatenate([zero, a, zero], axis=1)       # [cin, hw + 2W + 2]

    # Column masks for the horizontal halo (zero the row-to-row wrap).
    col = jax.lax.broadcasted_iota(jnp.int32, (cin, hw), 1) % W
    not_left = col > 0           # tap reads column w-1: invalid at w == 0
    not_right = col < (W - 1)    # tap reads column w+1: invalid at w == W-1

    taps = []
    for ky in range(3):
        for kx in range(3):
            d = (ky - 1) * W + (kx - 1)
            t = az[:, pad + d:pad + d + hw]             # static lane slice
            if kx == 0:
                t = jnp.where(not_left, t, 0.0)
            elif kx == 2:
                t = jnp.where(not_right, t, 0.0)
            taps.append(t)
    tap_mat = jnp.concatenate(taps, axis=0)             # [9*cin, hw]

    # Single GEMM, f32 accumulation; output stays lane-dense [cout, hw].
    y = jnp.dot(w_ref[...], tap_mat, preferred_element_type=jnp.float32)
    y_ref[0] = y.astype(y_ref.dtype)

    # BN phase 1: per-image channel sum and CENTERED sum of squares.
    s = jnp.sum(y, axis=1, keepdims=True)               # [cout, 1]
    c = y - s * (1.0 / hw)
    psum_ref[0] = s
    m2_ref[0] = jnp.sum(c * c, axis=1, keepdims=True)


def _conv_stats_kernel(x_ref, w_ref, y_ref, psum_ref, m2_ref, *, H, W):
    _conv_core(x_ref[0], w_ref, y_ref, psum_ref, m2_ref, H, W)


def _act_conv_stats_kernel(x_ref, scale_ref, shift_ref, w_ref,
                           y_ref, psum_ref, m2_ref, *, H, W):
    # Fused previous-stage BN affine + ReLU on the input, then conv + stats.
    a = jnp.maximum(x_ref[0] * scale_ref[...] + shift_ref[...], 0.0)
    _conv_core(a, w_ref, y_ref, psum_ref, m2_ref, H, W)


def _bn_relu_kernel(y_ref, scale_ref, shift_ref, out_ref):
    out_ref[...] = jnp.maximum(
        y_ref[...] * scale_ref[...] + shift_ref[...], 0.0)


# --------------------------------------------------------------------------
# Wrappers
# --------------------------------------------------------------------------
def _conv3x3_stats(x, w_packed, H, W, in_scale=None, in_shift=None):
    """x: (N, Cin, H*W) f32; w_packed: (Cout, 9*Cin).  Optional fused input
    affine+ReLU.  Returns (raw conv (N,Cout,H*W), sums, centered sumsq)."""
    N, Cin, HW = x.shape
    Cout = w_packed.shape[0]

    x_spec = pl.BlockSpec((1, Cin, HW), lambda n: (n, 0, 0))
    w_spec = pl.BlockSpec((Cout, 9 * Cin), lambda n: (0, 0))
    out_specs = [
        pl.BlockSpec((1, Cout, HW), lambda n: (n, 0, 0)),
        pl.BlockSpec((1, Cout, 1), lambda n: (n, 0, 0)),
        pl.BlockSpec((1, Cout, 1), lambda n: (n, 0, 0)),
    ]
    out_shape = (
        jax.ShapeDtypeStruct((N, Cout, HW), jnp.float32),
        jax.ShapeDtypeStruct((N, Cout, 1), jnp.float32),
        jax.ShapeDtypeStruct((N, Cout, 1), jnp.float32),
    )

    if in_scale is None:
        kernel = functools.partial(_conv_stats_kernel, H=H, W=W)
        in_specs = [x_spec, w_spec]
        args = (x, w_packed)
    else:
        kernel = functools.partial(_act_conv_stats_kernel, H=H, W=W)
        ss_spec = pl.BlockSpec((Cin, 1), lambda n: (0, 0))
        in_specs = [x_spec, ss_spec, ss_spec, w_spec]
        args = (x, in_scale.reshape(Cin, 1), in_shift.reshape(Cin, 1),
                w_packed)

    return pl.pallas_call(
        kernel,
        grid_spec=pltpu.PrefetchScalarGridSpec(
            num_scalar_prefetch=0, grid=(N,),
            in_specs=in_specs, out_specs=out_specs),
        out_shape=out_shape,
        compiler_params=pltpu.CompilerParams(
            dimension_semantics=("parallel",)),
    )(*args)


def _bn_affine_from_partials(psum, m2, count, gamma, beta, eps):
    """Combine per-image (sum, centered sumsq) partials (exact parallel
    variance) and fold BN into scale/shift."""
    sums = psum[:, :, 0]                                 # (N, C)
    m2s = m2[:, :, 0]                                    # (N, C)
    total = sums.shape[0] * count
    mean_i = sums / count
    mean = jnp.sum(sums, axis=0) / total                 # (C,)
    m2_tot = jnp.sum(m2s, axis=0) + count * jnp.sum(
        (mean_i - mean[None, :]) ** 2, axis=0)
    var = jnp.maximum(m2_tot / total, 0.0)
    scale = gamma.astype(jnp.float32) * jax.lax.rsqrt(var + eps)
    shift = beta.astype(jnp.float32) - mean * scale
    return scale, shift


def _bn_relu_apply(y, scale, shift):
    """Final BN affine + ReLU; blocks pack whole images (lane-dense H*W)."""
    N, C, HW = y.shape
    img_bytes = C * HW * 4
    nb = N
    while nb > 1 and (N % nb != 0 or nb * img_bytes > 4 * 1024 * 1024):
        nb -= 1
    return pl.pallas_call(
        _bn_relu_kernel,
        grid_spec=pltpu.PrefetchScalarGridSpec(
            num_scalar_prefetch=0, grid=(N // nb,),
            in_specs=[
                pl.BlockSpec((nb, C, HW), lambda i: (i, 0, 0)),
                pl.BlockSpec((1, C, 1), lambda i: (0, 0, 0)),
                pl.BlockSpec((1, C, 1), lambda i: (0, 0, 0)),
            ],
            out_specs=pl.BlockSpec((nb, C, HW), lambda i: (i, 0, 0))),
        out_shape=jax.ShapeDtypeStruct((N, C, HW), jnp.float32),
        compiler_params=pltpu.CompilerParams(
            dimension_semantics=("parallel",)),
    )(y, scale.reshape(1, C, 1), shift.reshape(1, C, 1))


def double_conv(x_nchw, params, eps=1e-5):
    """Pallas DoubleConv.forward (NCHW in, NCHW out), training-mode BN."""
    w1, g1, b1, w2, g2, b2 = params
    N, Cin, H, W = x_nchw.shape
    Cout1, Cout2 = w1.shape[0], w2.shape[0]
    HW = H * W

    # Free reshape: NCHW -> (N, C, H*W); channels on sublanes, spatial on lanes.
    x = x_nchw.reshape(N, Cin, HW).astype(jnp.float32)
    # (Cout, Cin, 3, 3) -> (Cout, 3, 3, Cin) -> (Cout, 9*Cin), K = (ky, kx, ci)
    w1p = jnp.transpose(w1, (0, 2, 3, 1)).reshape(Cout1, 9 * Cin)
    w1p = w1p.astype(jnp.float32)
    w2p = jnp.transpose(w2, (0, 2, 3, 1)).reshape(Cout2, 9 * Cout1)
    w2p = w2p.astype(jnp.float32)

    # Stage 1: conv1 + BN1 partial statistics.
    y1, s1, m21 = _conv3x3_stats(x, w1p, H, W)
    scale1, shift1 = _bn_affine_from_partials(s1, m21, HW, g1, b1, eps)

    # Stage 2: fused BN1-apply + ReLU + conv2 + BN2 partial statistics.
    y2, s2, m22 = _conv3x3_stats(y1, w2p, H, W,
                                 in_scale=scale1, in_shift=shift1)
    scale2, shift2 = _bn_affine_from_partials(s2, m22, HW, g2, b2, eps)

    # Stage 3: BN2 apply + ReLU; output is already in NCHW layout.
    out = _bn_relu_apply(y2, scale2, shift2)
    return out.reshape(N, Cout2, H, W)


# ---------------- pure-JAX reference (for correctness check) ----------------
def _ref_conv_bn_relu(x_nchw, w, gamma, beta, eps=1e-5):
    y = jax.lax.conv_general_dilated(
        x_nchw, w, window_strides=(1, 1), padding=((1, 1), (1, 1)),
        dimension_numbers=("NCHW", "OIHW", "NCHW"),
        precision=jax.lax.Precision.HIGHEST)
    mean = jnp.mean(y, axis=(0, 2, 3), keepdims=True)
    var = jnp.mean((y - mean) ** 2, axis=(0, 2, 3), keepdims=True)
    y = (y - mean) * jax.lax.rsqrt(var + eps)
    y = y * gamma[None, :, None, None] + beta[None, :, None, None]
    return jnp.maximum(y, 0.0)


def _ref_double_conv(x, params, eps=1e-5):
    w1, g1, b1, w2, g2, b2 = params
    y = _ref_conv_bn_relu(x, w1, g1, b1, eps)
    return _ref_conv_bn_relu(y, w2, g2, b2, eps)


if __name__ == "__main__":
    N, in_c, out_c, H, W = 2, 4, 8, 16, 16

    key = jax.random.PRNGKey(0)
    kx, kw1, kw2 = jax.random.split(key, 3)

    x = jax.random.normal(kx, (N, in_c, H, W), dtype=jnp.float32)
    w1 = 0.1 * jax.random.normal(kw1, (out_c, in_c, 3, 3), dtype=jnp.float32)
    w2 = 0.1 * jax.random.normal(kw2, (out_c, out_c, 3, 3), dtype=jnp.float32)
    g1 = jnp.ones((out_c,), jnp.float32)
    b1 = jnp.zeros((out_c,), jnp.float32)
    g2 = jnp.ones((out_c,), jnp.float32)
    b2 = jnp.zeros((out_c,), jnp.float32)
    params = (w1, g1, b1, w2, g2, b2)

    out = jax.block_until_ready(jax.jit(double_conv)(x, params))
    assert out.shape == (N, out_c, H, W) and out.dtype == jnp.float32

    ref = jax.block_until_ready(_ref_double_conv(x, params))
    err = float(jnp.max(jnp.abs(out - ref)))
    assert jnp.allclose(out, ref, rtol=1e-3, atol=1e-3), err

    print("KERNEL_OK")
</pallas_src>

<mosaic_0001>
module attributes {stable_mosaic.version = 11 : i64} {
  func.func @_conv_stats_kernel(%arg0: i32, %arg1: memref<1x4x256xf32, #tpu.memory_space<vmem>>, %arg2: memref<8x36xf32, #tpu.memory_space<vmem>>, %arg3: memref<1x8x256xf32, #tpu.memory_space<vmem>>, %arg4: memref<1x8x1xf32, #tpu.memory_space<vmem>>, %arg5: memref<1x8x1xf32, #tpu.memory_space<vmem>>) attributes {dimension_semantics = [#tpu.dimension_semantics<parallel>], iteration_bounds = array<i64: 2>, scalar_prefetch = 0 : i64, scratch_operands = 0 : i64, tpu.core_type = #tpu.core_type<tc>, window_params = [{transform_indices = @transform_0, window_bounds = array<i64: 1, 4, 256>}, {pipeline_mode = #tpu.pipeline_mode<synchronous>, transform_indices = @transform_1, window_bounds = array<i64: 8, 36>}, {transform_indices = @transform_2, window_bounds = array<i64: 1, 8, 256>}, {transform_indices = @transform_3, window_bounds = array<i64: 1, 8, 1>}, {transform_indices = @transform_4, window_bounds = array<i64: 1, 8, 1>}]} {
    %c0 = arith.constant 0 : index
    %c0_0 = arith.constant 0 : index
    %c0_1 = arith.constant 0 : index
    %0 = vector.load %arg1[%c0, %c0_0, %c0_1] : memref<1x4x256xf32, #tpu.memory_space<vmem>>, vector<1x4x256xf32>
    %1 = vector.shape_cast %0 : vector<1x4x256xf32> to vector<4x256xf32>
    %cst = arith.constant 0.000000e+00 : f32
    %2 = vector.broadcast %cst : f32 to vector<4x17xf32>
    %3 = tpu.concatenate %2, %1, %2 in 1 : vector<4x17xf32>, vector<4x256xf32>, vector<4x17xf32> -> vector<4x290xf32>
    %4 = tpu.iota {dimensions = array<i32: 1>} : vector<4x256xi32>
    %c16_i32 = arith.constant 16 : i32
    %c0_i32 = arith.constant 0 : i32
    %5 = arith.cmpi eq, %c16_i32, %c0_i32 : i32
    %c1_i32 = arith.constant 1 : i32
    %6 = arith.select %5, %c1_i32, %c16_i32 : i32
    %7 = vector.broadcast %6 : i32 to vector<4x256xi32>
    %8 = arith.remsi %4, %7 : vector<4x256xi32>
    %c0_i32_2 = arith.constant 0 : i32
    %9 = vector.broadcast %c0_i32_2 : i32 to vector<4x256xi32>
    %10 = arith.cmpi ne, %8, %9 : vector<4x256xi32>
    %c0_i32_3 = arith.constant 0 : i32
    %11 = vector.broadcast %c0_i32_3 : i32 to vector<4x256xi32>
    %12 = arith.cmpi slt, %8, %11 : vector<4x256xi32>
    %c0_i32_4 = arith.constant 0 : i32
    %13 = arith.cmpi slt, %6, %c0_i32_4 : i32
    %14 = vector.broadcast %13 : i1 to vector<4x256xi1>
    %15 = vector.broadcast %14 : vector<4x256xi1> to vector<4x256xi1>
    %16 = arith.xori %12, %15 : vector<4x256xi1>
    %17 = arith.andi %16, %10 : vector<4x256xi1>
    %18 = vector.broadcast %6 : i32 to vector<4x256xi32>
    %19 = arith.addi %8, %18 : vector<4x256xi32>
    %20 = arith.select %17, %19, %8 : vector<4x256xi1>, vector<4x256xi32>
    %c0_i32_5 = arith.constant 0 : i32
    %21 = vector.broadcast %c0_i32_5 : i32 to vector<4x256xi32>
    %22 = arith.cmpi sgt, %20, %21 : vector<4x256xi32>
    %c15_i32 = arith.constant 15 : i32
    %23 = vector.broadcast %c15_i32 : i32 to vector<4x256xi32>
    %24 = arith.cmpi slt, %20, %23 : vector<4x256xi32>
    %25 = vector.extract_strided_slice %3 {offsets = [0, 0], sizes = [4, 256], strides = [1, 1]} : vector<4x290xf32> to vector<4x256xf32>
    %cst_6 = arith.constant 0.000000e+00 : f32
    %26 = vector.broadcast %cst_6 : f32 to vector<4x256xf32>
    %27 = arith.select %22, %25, %26 : vector<4x256xi1>, vector<4x256xf32>
    %28 = vector.extract_strided_slice %3 {offsets = [0, 1], sizes = [4, 256], strides = [1, 1]} : vector<4x290xf32> to vector<4x256xf32>
    %29 = vector.extract_strided_slice %3 {offsets = [0, 2], sizes = [4, 256], strides = [1, 1]} : vector<4x290xf32> to vector<4x256xf32>
    %cst_7 = arith.constant 0.000000e+00 : f32
    %30 = vector.broadcast %cst_7 : f32 to vector<4x256xf32>
    %31 = arith.select %24, %29, %30 : vector<4x256xi1>, vector<4x256xf32>
    %32 = vector.extract_strided_slice %3 {offsets = [0, 16], sizes = [4, 256], strides = [1, 1]} : vector<4x290xf32> to vector<4x256xf32>
    %cst_8 = arith.constant 0.000000e+00 : f32
    %33 = vector.broadcast %cst_8 : f32 to vector<4x256xf32>
    %34 = arith.select %22, %32, %33 : vector<4x256xi1>, vector<4x256xf32>
    %35 = vector.extract_strided_slice %3 {offsets = [0, 17], sizes = [4, 256], strides = [1, 1]} : vector<4x290xf32> to vector<4x256xf32>
    %36 = vector.extract_strided_slice %3 {offsets = [0, 18], sizes = [4, 256], strides = [1, 1]} : vector<4x290xf32> to vector<4x256xf32>
    %cst_9 = arith.constant 0.000000e+00 : f32
    %37 = vector.broadcast %cst_9 : f32 to vector<4x256xf32>
    %38 = arith.select %24, %36, %37 : vector<4x256xi1>, vector<4x256xf32>
    %39 = vector.extract_strided_slice %3 {offsets = [0, 32], sizes = [4, 256], strides = [1, 1]} : vector<4x290xf32> to vector<4x256xf32>
    %cst_10 = arith.constant 0.000000e+00 : f32
    %40 = vector.broadcast %cst_10 : f32 to vector<4x256xf32>
    %41 = arith.select %22, %39, %40 : vector<4x256xi1>, vector<4x256xf32>
    %42 = vector.extract_strided_slice %3 {offsets = [0, 33], sizes = [4, 256], strides = [1, 1]} : vector<4x290xf32> to vector<4x256xf32>
    %43 = vector.extract_strided_slice %3 {offsets = [0, 34], sizes = [4, 256], strides = [1, 1]} : vector<4x290xf32> to vector<4x256xf32>
    %cst_11 = arith.constant 0.000000e+00 : f32
    %44 = vector.broadcast %cst_11 : f32 to vector<4x256xf32>
    %45 = arith.select %24, %43, %44 : vector<4x256xi1>, vector<4x256xf32>
    %46 = tpu.concatenate %27, %28, %31, %34, %35, %38, %41, %42, %45 in 0 : vector<4x256xf32>, vector<4x256xf32>, vector<4x256xf32>, vector<4x256xf32>, vector<4x256xf32>, vector<4x256xf32>, vector<4x256xf32>, vector<4x256xf32>, vector<4x256xf32> -> vector<36x256xf32>
    %c0_12 = arith.constant 0 : index
    %c0_13 = arith.constant 0 : index
    %47 = vector.load %arg2[%c0_12, %c0_13] : memref<8x36xf32, #tpu.memory_space<vmem>>, vector<8x36xf32>
    %cst_14 = arith.constant dense<0.000000e+00> : vector<8x256xf32>
    %48 = tpu.matmul %47, %46, %cst_14 {dimension_numbers = #tpu.dot_dimension_numbers<[1], [0], [0], [1], [0, 0, 1, 1], [], []>} : vector<8x36xf32>, vector<36x256xf32>, vector<8x256xf32> -> vector<8x256xf32>
    %c0_15 = arith.constant 0 : index
    %c0_16 = arith.constant 0 : index
    %c0_17 = arith.constant 0 : index
    %49 = vector.load %arg3[%c0_15, %c0_16, %c0_17] : memref<1x8x256xf32, #tpu.memory_space<vmem>>, vector<1x8x256xf32>
    %50 = vector.shape_cast %49 : vector<1x8x256xf32> to vector<8x256xf32>
    %51 = vector.shape_cast %48 : vector<8x256xf32> to vector<1x8x256xf32>
    tpu.vector_store %arg3[%c0_15, %c0_16, %c0_17], %51 {strides = array<i32>} : memref<1x8x256xf32, #tpu.memory_space<vmem>>, vector<1x8x256xf32>,
    %cst_18 = arith.constant dense<0.000000e+00> : vector<8xf32>
    %52 = vector.multi_reduction <add>, %48, %cst_18 [1] : vector<8x256xf32> to vector<8xf32>
    %53 = vector.shape_cast %52 : vector<8xf32> to vector<8x1xf32>
    %cst_19 = arith.constant 3.906250e-03 : f32
    %54 = vector.broadcast %cst_19 : f32 to vector<8x1xf32>
    %55 = arith.mulf %53, %54 : vector<8x1xf32>
    %56 = vector.broadcast %55 : vector<8x1xf32> to vector<8x256xf32>
    %57 = arith.subf %48, %56 : vector<8x256xf32>
    %c0_20 = arith.constant 0 : index
    %c0_21 = arith.constant 0 : index
    %c0_22 = arith.constant 0 : index
    %58 = vector.load %arg4[%c0_20, %c0_21, %c0_22] : memref<1x8x1xf32, #tpu.memory_space<vmem>>, vector<1x8x1xf32>
    %59 = vector.shape_cast %58 : vector<1x8x1xf32> to vector<8x1xf32>
    %60 = vector.shape_cast %53 : vector<8x1xf32> to vector<1x8x1xf32>
    tpu.vector_store %arg4[%c0_20, %c0_21, %c0_22], %60 {strides = array<i32>} : memref<1x8x1xf32, #tpu.memory_space<vmem>>, vector<1x8x1xf32>,
    %61 = arith.mulf %57, %57 : vector<8x256xf32>
    %cst_23 = arith.constant dense<0.000000e+00> : vector<8xf32>
    %62 = vector.multi_reduction <add>, %61, %cst_23 [1] : vector<8x256xf32> to vector<8xf32>
    %63 = vector.shape_cast %62 : vector<8xf32> to vector<8x1xf32>
    %c0_24 = arith.constant 0 : index
    %c0_25 = arith.constant 0 : index
    %c0_26 = arith.constant 0 : index
    %64 = vector.load %arg5[%c0_24, %c0_25, %c0_26] : memref<1x8x1xf32, #tpu.memory_space<vmem>>, vector<1x8x1xf32>
    %65 = vector.shape_cast %64 : vector<1x8x1xf32> to vector<8x1xf32>
    %66 = vector.shape_cast %63 : vector<8x1xf32> to vector<1x8x1xf32>
    tpu.vector_store %arg5[%c0_24, %c0_25, %c0_26], %66 {strides = array<i32>} : memref<1x8x1xf32, #tpu.memory_space<vmem>>, vector<1x8x1xf32>,
    return
  }
  func.func @transform_0(%arg0: i32) -> (i32, i32, i32) {
    %c0_i32 = arith.constant 0 : i32
    %c0_i32_0 = arith.constant 0 : i32
    %c0_i32_1 = arith.constant 0 : i32
    return %arg0, %c0_i32, %c0_i32_0 : i32, i32, i32
  }
  func.func @transform_1(%arg0: i32) -> (i32, i32) {
    %c0_i32 = arith.constant 0 : i32
    %c0_i32_0 = arith.constant 0 : i32
    %c0_i32_1 = arith.constant 0 : i32
    return %c0_i32, %c0_i32_0 : i32, i32
  }
  func.func @transform_2(%arg0: i32) -> (i32, i32, i32) {
    %c0_i32 = arith.constant 0 : i32
    %c0_i32_0 = arith.constant 0 : i32
    %c0_i32_1 = arith.constant 0 : i32
    return %arg0, %c0_i32, %c0_i32_0 : i32, i32, i32
  }
  func.func @transform_3(%arg0: i32) -> (i32, i32, i32) {
    %c0_i32 = arith.constant 0 : i32
    %c0_i32_0 = arith.constant 0 : i32
    %c0_i32_1 = arith.constant 0 : i32
    return %arg0, %c0_i32, %c0_i32_0 : i32, i32, i32
  }
  func.func @transform_4(%arg0: i32) -> (i32, i32, i32) {
    %c0_i32 = arith.constant 0 : i32
    %c0_i32_0 = arith.constant 0 : i32
    %c0_i32_1 = arith.constant 0 : i32
    return %arg0, %c0_i32, %c0_i32_0 : i32, i32, i32
  }
}

module attributes {stable_mosaic.version = 11 : i64} {
  func.func @_act_conv_stats_kernel(%arg0: i32, %arg1: memref<1x8x256xf32, #tpu.memory_space<vmem>>, %arg2: memref<8x1xf32, #tpu.memory_space<vmem>>, %arg3: memref<8x1xf32, #tpu.memory_space<vmem>>, %arg4: memref<8x72xf32, #tpu.memory_space<vmem>>, %arg5: memref<1x8x256xf32, #tpu.memory_space<vmem>>, %arg6: memref<1x8x1xf32, #tpu.memory_space<vmem>>, %arg7: memref<1x8x1xf32, #tpu.memory_space<vmem>>) attributes {dimension_semantics = [#tpu.dimension_semantics<parallel>], iteration_bounds = array<i64: 2>, scalar_prefetch = 0 : i64, scratch_operands = 0 : i64, tpu.core_type = #tpu.core_type<tc>, window_params = [{transform_indices = @transform_0, window_bounds = array<i64: 1, 8, 256>}, {pipeline_mode = #tpu.pipeline_mode<synchronous>, transform_indices = @transform_1, window_bounds = array<i64: 8, 1>}, {pipeline_mode = #tpu.pipeline_mode<synchronous>, transform_indices = @transform_2, window_bounds = array<i64: 8, 1>}, {pipeline_mode = #tpu.pipeline_mode<synchronous>, transform_indices = @transform_3, window_bounds = array<i64: 8, 72>}, {transform_indices = @transform_4, window_bounds = array<i64: 1, 8, 256>}, {transform_indices = @transform_5, window_bounds = array<i64: 1, 8, 1>}, {transform_indices = @transform_6, window_bounds = array<i64: 1, 8, 1>}]} {
    %c0 = arith.constant 0 : index
    %c0_0 = arith.constant 0 : index
    %c0_1 = arith.constant 0 : index
    %0 = vector.load %arg1[%c0, %c0_0, %c0_1] : memref<1x8x256xf32, #tpu.memory_space<vmem>>, vector<1x8x256xf32>
    %1 = vector.shape_cast %0 : vector<1x8x256xf32> to vector<8x256xf32>
    %c0_2 = arith.constant 0 : index
    %c0_3 = arith.constant 0 : index
    %2 = vector.load %arg2[%c0_2, %c0_3] : memref<8x1xf32, #tpu.memory_space<vmem>>, vector<8x1xf32>
    %3 = vector.broadcast %2 : vector<8x1xf32> to vector<8x256xf32>
    %4 = arith.mulf %1, %3 : vector<8x256xf32>
    %c0_4 = arith.constant 0 : index
    %c0_5 = arith.constant 0 : index
    %5 = vector.load %arg3[%c0_4, %c0_5] : memref<8x1xf32, #tpu.memory_space<vmem>>, vector<8x1xf32>
    %6 = vector.broadcast %5 : vector<8x1xf32> to vector<8x256xf32>
    %7 = arith.addf %4, %6 : vector<8x256xf32>
    %cst = arith.constant 0.000000e+00 : f32
    %8 = vector.broadcast %cst : f32 to vector<8x256xf32>
    %9 = arith.maximumf %7, %8 : vector<8x256xf32>
    %cst_6 = arith.constant 0.000000e+00 : f32
    %10 = vector.broadcast %cst_6 : f32 to vector<8x17xf32>
    %11 = tpu.concatenate %10, %9, %10 in 1 : vector<8x17xf32>, vector<8x256xf32>, vector<8x17xf32> -> vector<8x290xf32>
    %12 = tpu.iota {dimensions = array<i32: 1>} : vector<8x256xi32>
    %c16_i32 = arith.constant 16 : i32
    %c0_i32 = arith.constant 0 : i32
    %13 = arith.cmpi eq, %c16_i32, %c0_i32 : i32
    %c1_i32 = arith.constant 1 : i32
    %14 = arith.select %13, %c1_i32, %c16_i32 : i32
    %15 = vector.broadcast %14 : i32 to vector<8x256xi32>
    %16 = arith.remsi %12, %15 : vector<8x256xi32>
    %c0_i32_7 = arith.constant 0 : i32
    %17 = vector.broadcast %c0_i32_7 : i32 to vector<8x256xi32>
    %18 = arith.cmpi ne, %16, %17 : vector<8x256xi32>
    %c0_i32_8 = arith.constant 0 : i32
    %19 = vector.broadcast %c0_i32_8 : i32 to vector<8x256xi32>
    %20 = arith.cmpi slt, %16, %19 : vector<8x256xi32>
    %c0_i32_9 = arith.constant 0 : i32
    %21 = arith.cmpi slt, %14, %c0_i32_9 : i32
    %22 = vector.broadcast %21 : i1 to vector<8x256xi1>
    %23 = vector.broadcast %22 : vector<8x256xi1> to vector<8x256xi1>
    %24 = arith.xori %20, %23 : vector<8x256xi1>
    %25 = arith.andi %24, %18 : vector<8x256xi1>
    %26 = vector.broadcast %14 : i32 to vector<8x256xi32>
    %27 = arith.addi %16, %26 : vector<8x256xi32>
    %28 = arith.select %25, %27, %16 : vector<8x256xi1>, vector<8x256xi32>
    %c0_i32_10 = arith.constant 0 : i32
    %29 = vector.broadcast %c0_i32_10 : i32 to vector<8x256xi32>
    %30 = arith.cmpi sgt, %28, %29 : vector<8x256xi32>
    %c15_i32 = arith.constant 15 : i32
    %31 = vector.broadcast %c15_i32 : i32 to vector<8x256xi32>
    %32 = arith.cmpi slt, %28, %31 : vector<8x256xi32>
    %33 = vector.extract_strided_slice %11 {offsets = [0, 0], sizes = [8, 256], strides = [1, 1]} : vector<8x290xf32> to vector<8x256xf32>
    %cst_11 = arith.constant 0.000000e+00 : f32
    %34 = vector.broadcast %cst_11 : f32 to vector<8x256xf32>
    %35 = arith.select %30, %33, %34 : vector<8x256xi1>, vector<8x256xf32>
    %36 = vector.extract_strided_slice %11 {offsets = [0, 1], sizes = [8, 256], strides = [1, 1]} : vector<8x290xf32> to vector<8x256xf32>
    %37 = vector.extract_strided_slice %11 {offsets = [0, 2], sizes = [8, 256], strides = [1, 1]} : vector<8x290xf32> to vector<8x256xf32>
    %cst_12 = arith.constant 0.000000e+00 : f32
    %38 = vector.broadcast %cst_12 : f32 to vector<8x256xf32>
    %39 = arith.select %32, %37, %38 : vector<8x256xi1>, vector<8x256xf32>
    %40 = vector.extract_strided_slice %11 {offsets = [0, 16], sizes = [8, 256], strides = [1, 1]} : vector<8x290xf32> to vector<8x256xf32>
    %cst_13 = arith.constant 0.000000e+00 : f32
    %41 = vector.broadcast %cst_13 : f32 to vector<8x256xf32>
    %42 = arith.select %30, %40, %41 : vector<8x256xi1>, vector<8x256xf32>
    %43 = vector.extract_strided_slice %11 {offsets = [0, 17], sizes = [8, 256], strides = [1, 1]} : vector<8x290xf32> to vector<8x256xf32>
    %44 = vector.extract_strided_slice %11 {offsets = [0, 18], sizes = [8, 256], strides = [1, 1]} : vector<8x290xf32> to vector<8x256xf32>
    %cst_14 = arith.constant 0.000000e+00 : f32
    %45 = vector.broadcast %cst_14 : f32 to vector<8x256xf32>
    %46 = arith.select %32, %44, %45 : vector<8x256xi1>, vector<8x256xf32>
    %47 = vector.extract_strided_slice %11 {offsets = [0, 32], sizes = [8, 256], strides = [1, 1]} : vector<8x290xf32> to vector<8x256xf32>
    %cst_15 = arith.constant 0.000000e+00 : f32
    %48 = vector.broadcast %cst_15 : f32 to vector<8x256xf32>
    %49 = arith.select %30, %47, %48 : vector<8x256xi1>, vector<8x256xf32>
    %50 = vector.extract_strided_slice %11 {offsets = [0, 33], sizes = [8, 256], strides = [1, 1]} : vector<8x290xf32> to vector<8x256xf32>
    %51 = vector.extract_strided_slice %11 {offsets = [0, 34], sizes = [8, 256], strides = [1, 1]} : vector<8x290xf32> to vector<8x256xf32>
    %cst_16 = arith.constant 0.000000e+00 : f32
    %52 = vector.broadcast %cst_16 : f32 to vector<8x256xf32>
    %53 = arith.select %32, %51, %52 : vector<8x256xi1>, vector<8x256xf32>
    %54 = tpu.concatenate %35, %36, %39, %42, %43, %46, %49, %50, %53 in 0 : vector<8x256xf32>, vector<8x256xf32>, vector<8x256xf32>, vector<8x256xf32>, vector<8x256xf32>, vector<8x256xf32>, vector<8x256xf32>, vector<8x256xf32>, vector<8x256xf32> -> vector<72x256xf32>
    %c0_17 = arith.constant 0 : index
    %c0_18 = arith.constant 0 : index
    %55 = vector.load %arg4[%c0_17, %c0_18] : memref<8x72xf32, #tpu.memory_space<vmem>>, vector<8x72xf32>
    %cst_19 = arith.constant dense<0.000000e+00> : vector<8x256xf32>
    %56 = tpu.matmul %55, %54, %cst_19 {dimension_numbers = #tpu.dot_dimension_numbers<[1], [0], [0], [1], [0, 0, 1, 1], [], []>} : vector<8x72xf32>, vector<72x256xf32>, vector<8x256xf32> -> vector<8x256xf32>
    %c0_20 = arith.constant 0 : index
    %c0_21 = arith.constant 0 : index
    %c0_22 = arith.constant 0 : index
    %57 = vector.load %arg5[%c0_20, %c0_21, %c0_22] : memref<1x8x256xf32, #tpu.memory_space<vmem>>, vector<1x8x256xf32>
    %58 = vector.shape_cast %57 : vector<1x8x256xf32> to vector<8x256xf32>
    %59 = vector.shape_cast %56 : vector<8x256xf32> to vector<1x8x256xf32>
    tpu.vector_store %arg5[%c0_20, %c0_21, %c0_22], %59 {strides = array<i32>} : memref<1x8x256xf32, #tpu.memory_space<vmem>>, vector<1x8x256xf32>,
    %cst_23 = arith.constant dense<0.000000e+00> : vector<8xf32>
    %60 = vector.multi_reduction <add>, %56, %cst_23 [1] : vector<8x256xf32> to vector<8xf32>
    %61 = vector.shape_cast %60 : vector<8xf32> to vector<8x1xf32>
    %cst_24 = arith.constant 3.906250e-03 : f32
    %62 = vector.broadcast %cst_24 : f32 to vector<8x1xf32>
    %63 = arith.mulf %61, %62 : vector<8x1xf32>
    %64 = vector.broadcast %63 : vector<8x1xf32> to vector<8x256xf32>
    %65 = arith.subf %56, %64 : vector<8x256xf32>
    %c0_25 = arith.constant 0 : index
    %c0_26 = arith.constant 0 : index
    %c0_27 = arith.constant 0 : index
    %66 = vector.load %arg6[%c0_25, %c0_26, %c0_27] : memref<1x8x1xf32, #tpu.memory_space<vmem>>, vector<1x8x1xf32>
    %67 = vector.shape_cast %66 : vector<1x8x1xf32> to vector<8x1xf32>
    %68 = vector.shape_cast %61 : vector<8x1xf32> to vector<1x8x1xf32>
    tpu.vector_store %arg6[%c0_25, %c0_26, %c0_27], %68 {strides = array<i32>} : memref<1x8x1xf32, #tpu.memory_space<vmem>>, vector<1x8x1xf32>,
    %69 = arith.mulf %65, %65 : vector<8x256xf32>
    %cst_28 = arith.constant dense<0.000000e+00> : vector<8xf32>
    %70 = vector.multi_reduction <add>, %69, %cst_28 [1] : vector<8x256xf32> to vector<8xf32>
    %71 = vector.shape_cast %70 : vector<8xf32> to vector<8x1xf32>
    %c0_29 = arith.constant 0 : index
    %c0_30 = arith.constant 0 : index
    %c0_31 = arith.constant 0 : index
    %72 = vector.load %arg7[%c0_29, %c0_30, %c0_31] : memref<1x8x1xf32, #tpu.memory_space<vmem>>, vector<1x8x1xf32>
    %73 = vector.shape_cast %72 : vector<1x8x1xf32> to vector<8x1xf32>
    %74 = vector.shape_cast %71 : vector<8x1xf32> to vector<1x8x1xf32>
    tpu.vector_store %arg7[%c0_29, %c0_30, %c0_31], %74 {strides = array<i32>} : memref<1x8x1xf32, #tpu.memory_space<vmem>>, vector<1x8x1xf32>,
    return
  }
  func.func @transform_0(%arg0: i32) -> (i32, i32, i32) {
    %c0_i32 = arith.constant 0 : i32
    %c0_i32_0 = arith.constant 0 : i32
    %c0_i32_1 = arith.constant 0 : i32
    return %arg0, %c0_i32, %c0_i32_0 : i32, i32, i32
  }
  func.func @transform_1(%arg0: i32) -> (i32, i32) {
    %c0_i32 = arith.constant 0 : i32
    %c0_i32_0 = arith.constant 0 : i32
    %c0_i32_1 = arith.constant 0 : i32
    return %c0_i32, %c0_i32_0 : i32, i32
  }
  func.func @transform_2(%arg0: i32) -> (i32, i32) {
    %c0_i32 = arith.constant 0 : i32
    %c0_i32_0 = arith.constant 0 : i32
    %c0_i32_1 = arith.constant 0 : i32
    return %c0_i32, %c0_i32_0 : i32, i32
  }
  func.func @transform_3(%arg0: i32) -> (i32, i32) {
    %c0_i32 = arith.constant 0 : i32
    %c0_i32_0 = arith.constant 0 : i32
    %c0_i32_1 = arith.constant 0 : i32
    return %c0_i32, %c0_i32_0 : i32, i32
  }
  func.func @transform_4(%arg0: i32) -> (i32, i32, i32) {
    %c0_i32 = arith.constant 0 : i32
    %c0_i32_0 = arith.constant 0 : i32
    %c0_i32_1 = arith.constant 0 : i32
    return %arg0, %c0_i32, %c0_i32_0 : i32, i32, i32
  }
  func.func @transform_5(%arg0: i32) -> (i32, i32, i32) {
    %c0_i32 = arith.constant 0 : i32
    %c0_i32_0 = arith.constant 0 : i32
    %c0_i32_1 = arith.constant 0 : i32
    return %arg0, %c0_i32, %c0_i32_0 : i32, i32, i32
  }
  func.func @transform_6(%arg0: i32) -> (i32, i32, i32) {
    %c0_i32 = arith.constant 0 : i32
    %c0_i32_0 = arith.constant 0 : i32
    %c0_i32_1 = arith.constant 0 : i32
    return %arg0, %c0_i32, %c0_i32_0 : i32, i32, i32
  }
}

module attributes {stable_mosaic.version = 11 : i64} {
  func.func @_bn_relu_kernel(%arg0: i32, %arg1: memref<2x8x256xf32, #tpu.memory_space<vmem>>, %arg2: memref<1x8x1xf32, #tpu.memory_space<vmem>>, %arg3: memref<1x8x1xf32, #tpu.memory_space<vmem>>, %arg4: memref<2x8x256xf32, #tpu.memory_space<vmem>>) attributes {dimension_semantics = [#tpu.dimension_semantics<parallel>], iteration_bounds = array<i64: 1>, scalar_prefetch = 0 : i64, scratch_operands = 0 : i64, tpu.core_type = #tpu.core_type<tc>, window_params = [{transform_indices = @transform_0, window_bounds = array<i64: 2, 8, 256>}, {pipeline_mode = #tpu.pipeline_mode<synchronous>, transform_indices = @transform_1, window_bounds = array<i64: 1, 8, 1>}, {pipeline_mode = #tpu.pipeline_mode<synchronous>, transform_indices = @transform_2, window_bounds = array<i64: 1, 8, 1>}, {transform_indices = @transform_3, window_bounds = array<i64: 2, 8, 256>}]} {
    %c0 = arith.constant 0 : index
    %c0_0 = arith.constant 0 : index
    %c0_1 = arith.constant 0 : index
    %0 = vector.load %arg1[%c0, %c0_0, %c0_1] : memref<2x8x256xf32, #tpu.memory_space<vmem>>, vector<2x8x256xf32>
    %c0_2 = arith.constant 0 : index
    %c0_3 = arith.constant 0 : index
    %c0_4 = arith.constant 0 : index
    %1 = vector.load %arg2[%c0_2, %c0_3, %c0_4] : memref<1x8x1xf32, #tpu.memory_space<vmem>>, vector<1x8x1xf32>
    %2 = vector.broadcast %1 : vector<1x8x1xf32> to vector<2x8x256xf32>
    %3 = arith.mulf %0, %2 : vector<2x8x256xf32>
    %c0_5 = arith.constant 0 : index
    %c0_6 = arith.constant 0 : index
    %c0_7 = arith.constant 0 : index
    %4 = vector.load %arg3[%c0_5, %c0_6, %c0_7] : memref<1x8x1xf32, #tpu.memory_space<vmem>>, vector<1x8x1xf32>
    %5 = vector.broadcast %4 : vector<1x8x1xf32> to vector<2x8x256xf32>
    %6 = arith.addf %3, %5 : vector<2x8x256xf32>
    %cst = arith.constant 0.000000e+00 : f32
    %7 = vector.broadcast %cst : f32 to vector<2x8x256xf32>
    %8 = arith.maximumf %6, %7 : vector<2x8x256xf32>
    %c0_8 = arith.constant 0 : index
    %c0_9 = arith.constant 0 : index
    %c0_10 = arith.constant 0 : index
    %9 = vector.load %arg4[%c0_8, %c0_9, %c0_10] : memref<2x8x256xf32, #tpu.memory_space<vmem>>, vector<2x8x256xf32>
    tpu.vector_store %arg4[%c0_8, %c0_9, %c0_10], %8 {strides = array<i32>} : memref<2x8x256xf32, #tpu.memory_space<vmem>>, vector<2x8x256xf32>,
    return
  }
  func.func @transform_0(%arg0: i32) -> (i32, i32, i32) {
    %c0_i32 = arith.constant 0 : i32
    %c0_i32_0 = arith.constant 0 : i32
    %c0_i32_1 = arith.constant 0 : i32
    return %arg0, %c0_i32, %c0_i32_0 : i32, i32, i32
  }
  func.func @transform_1(%arg0: i32) -> (i32, i32, i32) {
    %c0_i32 = arith.constant 0 : i32
    %c0_i32_0 = arith.constant 0 : i32
    %c0_i32_1 = arith.constant 0 : i32
    %c0_i32_2 = arith.constant 0 : i32
    return %c0_i32, %c0_i32_0, %c0_i32_1 : i32, i32, i32
  }
  func.func @transform_2(%arg0: i32) -> (i32, i32, i32) {
    %c0_i32 = arith.constant 0 : i32
    %c0_i32_0 = arith.constant 0 : i32
    %c0_i32_1 = arith.constant 0 : i32
    %c0_i32_2 = arith.constant 0 : i32
    return %c0_i32, %c0_i32_0, %c0_i32_1 : i32, i32, i32
  }
  func.func @transform_3(%arg0: i32) -> (i32, i32, i32) {
    %c0_i32 = arith.constant 0 : i32
    %c0_i32_0 = arith.constant 0 : i32
    %c0_i32_1 = arith.constant 0 : i32
    return %arg0, %c0_i32, %c0_i32_0 : i32, i32, i32
  }
}

</mosaic_0001>

<bundles_post_ra>
// kernel: double_conv.5
= control target key start
LH: loop header
LB: loop body
LE: loop exit
PB: predicated region body
PF: predicated region fallthrough
CT: control target
= control target key end

     0   :  { %v52_v0 = vmov 0   ;;  %s103_s1 = inlined_call_operand.vmem [shape: f32[1,8,1], index: 1, kind: input, shape index: {}]   ;;  %s104_s2 = inlined_call_operand.vmem [shape: f32[1,8,1], index: 2, kind: input, shape index: {}]   ;;  %s105_s0 = inlined_call_operand.vmem [shape: f32[2,8,256], index: 0, kind: input, shape index: {}]   ;;  %s106_s3 = inlined_call_operand.vmem [shape: f32[2,8,256], index: 3, kind: output, shape index: {}]  }
   0x1   :  { %51 = vset.pattern.permute.xlu0 %v52_v0  ;;  %v18_v1 = vld [vmem:[%s103_s1] sm:$0xff]  ;;  %v15_v5 = vld [vmem:[%s105_s0 + $0x8] sm:$0xff]  ;;  %v16_v6 = vld [vmem:[%s105_s0 + $0x10] sm:$0xff] }
   0x2   :  { %21 = vperm.xlu0 %51, %v18_v1   ;;  %v28_v2 = vld [vmem:[%s104_s2] sm:$0xff]  ;;  %v17_v7 = vld [vmem:[%s105_s0 + $0x18] sm:$0xff] }
   0x3   :  { %v14_v4 = vld [vmem:[%s105_s0] sm:$0xff] }
   0xa   :  { %31 = vperm.xlu0 %51, %v28_v2  }
  0x74   :  { %v22_v3 = vpop.permute.xlu0 %21 }
  0x75   :  { %v24_v8 = vmul.f32 %v22_v3, %v14_v4  ;;  %v25_v9 = vmul.f32 %v22_v3, %v15_v5  ;;  %v26_v10 = vmul.f32 %v22_v3, %v16_v6  ;;  %v27_v11 = vmul.f32 %v22_v3, %v17_v7 }
  0x7c   :  { %v32_v12 = vpop.permute.xlu0 %31 }
  0x7d   :  { %v34_v13 = vadd.f32 %v32_v12, %v24_v8  ;;  %v35_v14 = vadd.f32 %v32_v12, %v25_v9  ;;  %v36_v15 = vadd.f32 %v32_v12, %v26_v10  ;;  %v37_v16 = vadd.f32 %v32_v12, %v27_v11 }
  0x7f   :  { %v38_v17 = vmax.f32 %v34_v13, 0.0  ;;  %v39_v18 = vmax.f32 %v35_v14, 0.0  ;;  %v40_v19 = vmax.f32 %v36_v15, 0.0  ;;  %v41_v20 = vmax.f32 %v37_v16, 0.0 }
  0x81   :  { %42 = vst [vmem:[%s106_s3] sm:$0xff] %v38_v17 }
  0x82   :  { %43 = vst [vmem:[%s106_s3 + $0x8] sm:$0xff] %v39_v18 }
  0x83   :  { %44 = vst [vmem:[%s106_s3 + $0x10] sm:$0xff] %v40_v19 }
  0x84   :  { %45 = vst [vmem:[%s106_s3 + $0x18] sm:$0xff] %v41_v20 }

// kernel: double_conv.4
= control target key start
LH: loop header
LB: loop body
LE: loop exit
PB: predicated region body
PF: predicated region fallthrough
CT: control target
= control target key end

     0   :  { %s733_s21 = smov 0   ;;  %s831_s0 = inlined_call_operand.vmem [shape: f32[2,8,256], index: 0, kind: input, shape index: {}]   ;;  %s832_s1 = inlined_call_operand.vmem [shape: f32[8,1], index: 1, kind: input, shape index: {}]   ;;  %s833_s2 = inlined_call_operand.vmem [shape: f32[8,1], index: 2, kind: input, shape index: {}]   ;;  %s834_s3 = inlined_call_operand.vmem [shape: f32[8,72], index: 3, kind: input, shape index: {}]   ;;  %s835_s4 = inlined_call_operand.vmem [shape: f32[2,8,256], index: 4, kind: output, shape index: {0}]   ;;  %s836_s5 = inlined_call_operand.vmem [shape: f32[2,8,1], index: 5, kind: output, shape index: {1}]   ;;  %s837_s6 = inlined_call_operand.vmem [shape: f32[2,8,1], index: 6, kind: output, shape index: {2}]  }
   0x1 LB: > { %s617_s22 = sadd.s32 4294967295, %s686_s21   ;;  %p621_p0 = scmp.ge.s32.totalorder %s686_s21, 1  ;;  %s686_s21 = sphi %s733_s21, %s17_s21  }
   0x2   : > { %p217_p1 = scmp.lt.s32.totalorder %s686_s21, 3 }
   0x4   : > { %p218_p2 = pnand %p621_p0, %p217_p1 }
   0x5   : > { %p255_p3 = scmp.lt.s32.totalorder (!%p218_p2), %s617_s22, 1  ;;  %s689_s7 = smov (!%p218_p2), 17  }
   0x6   : > { %221 = sbr.rel (%p218_p2) target bundleno = 800 (0x320), region = 36  ;;  %s690_s8 = smov (!%p218_p2), 94  }
   0x7   : > { %s691_s9 = smov (!%p218_p2), 95   ;;  %s692_s10 = smov (!%p218_p2), 96  }
   0x8   : > { %s693_s11 = smov (!%p218_p2), 110   ;;  %s694_s12 = smov (!%p218_p2), 111  }
   0x9   : > { %s695_s13 = smov (!%p218_p2), 112   ;;  %s696_s14 = smov (!%p218_p2), 126  }
   0xa   : > { %s697_s15 = smov (!%p218_p2), 127  }
   0xb   : > { %v275_v0 = vld [vmem:[%s832_s1] sm:$0xff]  ;;  %v688_v1 = vmov 0   ;;  %s847_s22 = smov (!%p255_p3, %s617_s22), 1  ;;  %vm299_vm0 = vcmask 138240   ;;  %v306_v19 = vlaneseq  ;;  %vm399_vm1 = vcmask 769024  }
   0xc   : > { %664 = vset.pattern.permute.xlu0 %v688_v1  ;;  %v283_v2 = vld [vmem:[%s833_s2] sm:$0xff]  ;;  %s644_s27 = sshll.u32 %s847_s22, 4  ;;  %vm434_vm4 = vcmask 777216   ;;  %vm386_vm5 = vcmask 785408   ;;  %vm373_vm8 = vcmask 900096   ;;  %vm423_vm9 = vcmask 908288  }
   0xd   : > { %278 = vperm.xlu0 %664, %v275_v0   ;;  %s259_s30 = scalar_lea.vmem %s831_s0, %s644_s27  ;;  %v307_v20 = vand.u32 127, %v306_v19  ;;  %vm360_vm10 = vcmask 916480   ;;  %vm347_vm11 = vcmask 1031168   ;;  %vm412_vm12 = vcmask 1039360   ;;  %s264_s20 = scalar_lea.vmem %s835_s4, %s644_s27 }
   0xe   : > { %v273_v4 = vld [vmem:[%s259_s30] sm:$0xff]  ;;  %v274_v8 = vld [vmem:[%s259_s30 + $0x8] sm:$0xff]  ;;  %vm440_vm13 = vcmask 588800   ;;  %s626_s23 = sshll.u32 %s847_s22, 3  ;;  %vm492_vm14 = vcmask 7168  }
   0xf   : > { %v313_v22 = vand.u32 15, %v307_v20  ;;  %v308_v27 = vadd.s32 128, %v307_v20  ;;  %s268_s26 = scalar_lea.vmem %s836_s5, %s626_s23  ;;  %s272_s29 = scalar_lea.vmem %s837_s6, %s626_s23 }
  0x11   : > { %vm771_vm2 = vcmp.lt.s32.totalorder %v313_v22, 15  ;;  %v320_v28 = vand.u32 15, %v308_v27  ;;  %vm783_vm6 = vcmp.gt.s32.totalorder %v313_v22, 0 }
  0x13   : > { %vm777_vm3 = vcmp.lt.s32.totalorder %v320_v28, 15  ;;  %vm787_vm7 = vcmp.gt.s32.totalorder %v320_v28, 0 }
  0x15   : > { %286 = vperm.xlu0 %664, %v283_v2  }
  0x7f   : > { %v279_v3 = vpop.permute.xlu0 %278 }
  0x80   : > { %v281_v5 = vmul.f32 %v279_v3, %v273_v4  ;;  %v282_v10 = vmul.f32 %v279_v3, %v274_v8 }
  0x87   : > { %v287_v6 = vpop.permute.xlu0 %286 }
  0x88   : > { %v289_v7 = vadd.f32 %v287_v6, %v281_v5  ;;  %v290_v11 = vadd.f32 %v287_v6, %v282_v10  ;;  %v439_v5 = vld [vmem:[%s834_s3] sm:$0xff] }
  0x8a   : > { %v291_v9 = vmax.f32 %v289_v7, 0.0  ;;  %v292_v12 = vmax.f32 %v290_v11, 0.0 }
  0x8c   : > { %295 = vrot.lane.b32.xlu1 %v291_v9, %s689_s7 }
  0x94   : > { %297 = vrot.lane.b32.xlu1 %v292_v12, %s689_s7 }
  0xfe   : > { %v296_v13 = vpop.permute.xlu1 %295 }
  0xff   : > { %v755_v14 = vsel %vm299_vm0, 0.0, %v296_v13 }
 0x100   : > { %393 = vrot.lane.b32.xlu2 %v755_v14, %s690_s8 }
 0x106   : > { %v298_v15 = vpop.permute.xlu1 %297 }
 0x107   : > { %v758_v16 = vsel %vm299_vm0, %v296_v13, %v298_v15  ;;  %v305_v17 = vsel %vm299_vm0, %v298_v15, 0.0 }
 0x108   : > { %397 = vrot.lane.b32.xlu0 %v305_v17, %s690_s8  ;;  %395 = vrot.lane.b32.xlu2 %v758_v16, %s690_s8  ;;  %v665_v18 = vpack.i.bf16 %v758_v16, %v755_v14 }
 0x10a   : > { %666 = vrot.lane.b32.xlu1 %v665_v18, %s691_s9 }
 0x110   : > { %380 = vrot.lane.b32.xlu0 %v755_v14, %s692_s10  ;;  %432 = vrot.lane.b32.xlu2 %v305_v17, %s691_s9 }
 0x112   : > { %382 = vrot.lane.b32.xlu1 %v758_v16, %s692_s10 }
 0x118   : > { %367 = vrot.lane.b32.xlu0 %v755_v14, %s693_s11  ;;  %384 = vrot.lane.b32.xlu2 %v305_v17, %s692_s10 }
 0x11a   : > { %369 = vrot.lane.b32.xlu1 %v758_v16, %s693_s11 }
 0x120   : > { %671 = vrot.lane.b32.xlu0 %v665_v18, %s694_s12  ;;  %371 = vrot.lane.b32.xlu2 %v305_v17, %s693_s11 }
 0x122   : > { %421 = vrot.lane.b32.xlu1 %v305_v17, %s694_s12 }
 0x128   : > { %356 = vrot.lane.b32.xlu0 %v758_v16, %s695_s13  ;;  %354 = vrot.lane.b32.xlu2 %v755_v14, %s695_s13 }
 0x12a   : > { %358 = vrot.lane.b32.xlu1 %v305_v17, %s695_s13 }
 0x130   : > { %343 = vrot.lane.b32.xlu0 %v758_v16, %s696_s14  ;;  %341 = vrot.lane.b32.xlu2 %v755_v14, %s696_s14 }
 0x132   : > { %345 = vrot.lane.b32.xlu1 %v305_v17, %s696_s14 }
 0x138   : > { %410 = vrot.lane.b32.xlu0 %v305_v17, %s697_s15  ;;  %676 = vrot.lane.b32.xlu2 %v665_v18, %s697_s15 }
 0x15a   : > { %v394_v21 = vpop.permute.xlu2 %393 }
 0x162   : > { %v396_v24 = vpop.permute.xlu2 %395 }
 0x163   : > { %v400_v25 = vsel %vm399_vm1, %v394_v21, %v396_v24 }
 0x164   : > { %628 = vmatpush.msk.msra.mxu0 %vm771_vm2, %v400_v25 }
 0x16a   : > { %v433_v26 = vpop.permute.xlu2 %432 }
 0x172   : > { %v385_v29 = vpop.permute.xlu2 %384 }
 0x17a   : > { %v398_v31 = vpop.permute.xlu0 %397  ;;  %v372_v38 = vpop.permute.xlu2 %371 }
 0x17b   : > { %v401_v32 = vsel %vm399_vm1, %v396_v24, %v398_v31 }
 0x17c   : > { %v667_v33 = vpop.permute.xlu1 %666  ;;  %635 = vmatpush.msk.msra.mxu1 %vm777_vm3, %v401_v32 }
 0x17d   : > { %v669_v34 = vunpack.i.h.bf16 %v667_v33  ;;  %v668_v35 = vunpack.i.l.bf16 %v667_v33 }
 0x17f   : > { %v435_v36 = vsel %vm434_vm4, %v668_v35, %v669_v34  ;;  %v436_v37 = vsel %vm434_vm4, %v669_v34, %v433_v26 }
 0x180   : > { %452 = vmatpush.msra.mxu0 %v435_v36  ;;  %472 = vmatpush.msra.mxu1 %v436_v37 }
 0x182   : > { %v381_v39 = vpop.permute.xlu0 %380  ;;  %v355_v45 = vpop.permute.xlu2 %354 }
 0x184   : > { %v383_v42 = vpop.permute.xlu1 %382 }
 0x185   : > { %v387_v43 = vsel %vm386_vm5, %v381_v39, %v383_v42  ;;  %v388_v44 = vsel %vm386_vm5, %v383_v42, %v385_v29 }
 0x186   : > { %629 = vmatpush.msk.msra.mxu0 %vm783_vm6, %v387_v43  ;;  %636 = vmatpush.msk.msra.mxu1 %vm787_vm7, %v388_v44 }
 0x18a   : > { %v368_v46 = vpop.permute.xlu0 %367  ;;  %v342_v53 = vpop.permute.xlu2 %341 }
 0x18c   : > { %v370_v47 = vpop.permute.xlu1 %369 }
 0x18d   : > { %v374_v48 = vsel %vm373_vm8, %v368_v46, %v370_v47  ;;  %v375_v49 = vsel %vm373_vm8, %v370_v47, %v372_v38 }
 0x18e   : > { %630 = vmatpush.msk.msra.mxu0 %vm771_vm2, %v374_v48  ;;  %637 = vmatpush.msk.msra.mxu1 %vm777_vm3, %v375_v49 }
 0x192   : > { %v672_v50 = vpop.permute.xlu0 %671  ;;  %v677_v61 = vpop.permute.xlu2 %676 }
 0x193   : > { %v674_v51 = vunpack.i.h.bf16 %v672_v50  ;;  %v673_v52 = vunpack.i.l.bf16 %v672_v50  ;;  %v679_v62 = vunpack.i.h.bf16 %v677_v61  ;;  %v678_v63 = vunpack.i.l.bf16 %v677_v61 }
 0x194   : > { %v422_v54 = vpop.permute.xlu1 %421 }
 0x195   : > { %v424_v55 = vsel %vm423_vm9, %v673_v52, %v674_v51  ;;  %v425_v56 = vsel %vm423_vm9, %v674_v51, %v422_v54  ;;  %v413_v3 = vsel %vm412_vm12, %v678_v63, %v679_v62 }
 0x196   : > { %455 = vmatpush.msra.mxu0 %v424_v55  ;;  %475 = vmatpush.msra.mxu1 %v425_v56 }
 0x19a   : > { %v357_v57 = vpop.permute.xlu0 %356 }
 0x19b   : > { %v361_v58 = vsel %vm360_vm10, %v355_v45, %v357_v57 }
 0x19c   : > { %v359_v59 = vpop.permute.xlu1 %358  ;;  %631 = vmatpush.msk.msra.mxu0 %vm783_vm6, %v361_v58 }
 0x19d   : > { %v362_v60 = vsel %vm360_vm10, %v357_v57, %v359_v59 }
 0x19e   : > { %638 = vmatpush.msk.msra.mxu1 %vm787_vm7, %v362_v60 }
 0x1a2   : > { %v344_v0 = vpop.permute.xlu0 %343 }
 0x1a3   : > { %v348_v1 = vsel %vm347_vm11, %v342_v53, %v344_v0 }
 0x1a4   : > { %v346_v2 = vpop.permute.xlu1 %345  ;;  %632 = vmatpush.msk.msra.mxu0 %vm771_vm2, %v348_v1 }
 0x1a5   : > { %v349_v4 = vsel %vm347_vm11, %v344_v0, %v346_v2 }
 0x1a6   : > { %458 = vmatpush.msra.mxu0 %v413_v3  ;;  %639 = vmatpush.msk.msra.mxu1 %vm777_vm3, %v349_v4 }
 0x1a8   : > { %633 = vmatpush.msk.msra.mxu0 %vm783_vm6, %v755_v14 }
 0x1a9   : > { %634 = vmatmul.msk.f32.vlgmr.msra.gmra.mxu0 %vm440_vm13, %v439_v5 }
 0x1aa   : > { %v411_v6 = vpop.permute.xlu0 %410 }
 0x1ab   : > { %v414_v7 = vsel %vm412_vm12, %v679_v62, %v411_v6 }
 0x1ac   : > { %478 = vmatpush.msra.mxu1 %v414_v7 }
 0x1ae   : > { %640 = vmatpush.msk.msra.mxu1 %vm787_vm7, %v758_v16 }
 0x1af   : > { %641 = vmatmul.msk.f32.vlgmr.msra.gmra.mxu1 %vm440_vm13, %v439_v5 }
 0x226   : > { %v461_v8 = vpop.f32.mrf.mxu0 }
 0x227   : > { %484 = vst [vmem:[%s264_s20] sm:$0xff] %v461_v8 }
 0x22c   : > { %v481_v9 = vpop.f32.mrf.mxu1 }
 0x22d   : > { %485 = vst [vmem:[%s264_s20 + $0x8] sm:$0xff] %v481_v9  ;;  %v486_v10 = vadd.f32 %v481_v9, %v461_v8 }
 0x22f   : > { %487 = vadd.xlane.f32.xlu1 %v486_v10 }
 0x2a2   : > { %v488_v11 = vpop.xlane.xlu1 %487 }
 0x2a3   : > { %v489_v12 = vmul.f32 0.00390625, %v488_v11  ;;  %493 = vst.msk [vmem:[%s268_s26] sm:$0xff] %vm492_vm14, %v488_v11 }
 0x2a5   : > { %v490_v13 = vsub.f32 %v461_v8, %v489_v12  ;;  %v491_v14 = vsub.f32 %v481_v9, %v489_v12 }
 0x2a7   : > { %v494_v15 = vmul.f32 %v490_v13, %v490_v13  ;;  %v495_v16 = vmul.f32 %v491_v14, %v491_v14 }
 0x2a9   : > { %v496_v17 = vadd.f32 %v495_v16, %v494_v15 }
 0x2ab   : > { %497 = vadd.xlane.f32.xlu2 %v496_v17 }
 0x31e   : > { %v498_v18 = vpop.xlane.xlu2 %497 }
 0x31f   : > { %499 = vst.msk [vmem:[%s272_s29] sm:$0xff] %vm492_vm14, %v498_v18 }
 0x320 PF: > { %s17_s21 = sadd.s32 1, %s686_s21  }
 0x321   : > { %p14_p4 = scmp.ge.s32.totalorder %s17_s21, 4  }
 0x323   :  { %16 = sbr.rel (!%p14_p4) target bundleno = 1 (0x1), region = 90 }

// kernel: double_conv.3
= control target key start
LH: loop header
LB: loop body
LE: loop exit
PB: predicated region body
PF: predicated region fallthrough
CT: control target
= control target key end

     0   :  { %s689_s15 = smov 0   ;;  %s798_s0 = inlined_call_operand.vmem [shape: f32[2,4,256], index: 0, kind: input, shape index: {}]   ;;  %s799_s1 = inlined_call_operand.vmem [shape: f32[8,36], index: 1, kind: input, shape index: {}]   ;;  %s800_s2 = inlined_call_operand.vmem [shape: f32[2,8,256], index: 2, kind: output, shape index: {0}]   ;;  %s801_s3 = inlined_call_operand.vmem [shape: f32[2,8,1], index: 3, kind: output, shape index: {1}]   ;;  %s802_s4 = inlined_call_operand.vmem [shape: f32[2,8,1], index: 4, kind: output, shape index: {2}]  }
   0x1 LB: > { %s576_s16 = sadd.s32 4294967295, %s653_s15   ;;  %p580_p0 = scmp.ge.s32.totalorder %s653_s15, 1  ;;  %s653_s15 = sphi %s689_s15, %s15_s15  }
   0x2   : > { %p167_p1 = scmp.lt.s32.totalorder %s653_s15, 3 }
   0x4   : > { %p168_p2 = pnand %p580_p0, %p167_p1 }
   0x5   : > { %p201_p3 = scmp.lt.s32.totalorder (!%p168_p2), %s576_s16, 1  ;;  %s655_s21 = smov (!%p168_p2), 17  }
   0x6   : > { %171 = sbr.rel (%p168_p2) target bundleno = 670 (0x29e), region = 28  ;;  %s656_s22 = smov (!%p168_p2), 94  }
   0x7   : > { %s657_s23 = smov (!%p168_p2), 110   ;;  %s658_s24 = smov (!%p168_p2), 112  }
   0x8   : > { %s659_s25 = smov (!%p168_p2), 96   ;;  %s660_s26 = smov (!%p168_p2), 126  }
   0x9   : > { %s661_s27 = smov (!%p168_p2), 111   ;;  %s662_s28 = smov (!%p168_p2), 95  }
   0xa   : > { %s663_s29 = smov (!%p168_p2), 127  }
   0xb   : > { %s812_s16 = smov (!%p201_p3, %s576_s16), 1  ;;  %vm228_vm0 = vcmask 138240   ;;  %v235_v15 = vlaneseq  ;;  %vm328_vm1 = vcmask 769024   ;;  %vm383_vm3 = vcmask 1043456  }
   0xc   : > { %s700_s17 = sshll.u32 %s812_s16, 3  ;;  %vm302_vm5 = vcmask 900096   ;;  %vm289_vm6 = vcmask 916480   ;;  %vm315_vm7 = vcmask 785408   ;;  %vm361_vm10 = vcmask 908288   ;;  %s594_s6 = sshll.u32 %s812_s16, 4 }
   0xd   : > { %s205_s20 = scalar_lea.vmem %s798_s0, %s700_s17  ;;  %v236_v17 = vand.u32 127, %v235_v15  ;;  %vm276_vm11 = vcmask 1031168   ;;  %vm378_vm12 = vcmask 777216   ;;  %vm344_vm13 = vcmask 1039360   ;;  %s210_s9 = scalar_lea.vmem %s800_s2, %s594_s6 }
   0xe   : > { %v219_v0 = vld [vmem:[%s205_s20] sm:$0xff]  ;;  %vm393_vm14 = vcmask 293888   ;;  %s214_s12 = scalar_lea.vmem %s801_s3, %s700_s17  ;;  %vm451_vm15 = vcmask 7168   ;;  %s218_s16 = scalar_lea.vmem %s802_s4, %s700_s17 }
   0xf   : > { %221 = vst [vmem:[#allocation1] ss:$2 sm:$0xff] %v219_v0  ;;  %v237_v19 = vadd.s32 128, %v236_v17  ;;  %v242_v23 = vand.u32 15, %v236_v17 }
  0x11   : > { %v249_v20 = vand.u32 15, %v237_v19  ;;  %vm720_vm4 = vcmp.lt.s32.totalorder %v242_v23, 15  ;;  %vm732_vm8 = vcmp.gt.s32.totalorder %v242_v23, 0 }
  0x13   : > { %vm716_vm2 = vcmp.lt.s32.totalorder %v249_v20, 15  ;;  %vm738_vm9 = vcmp.gt.s32.totalorder %v249_v20, 0 }
  0x16   : > { %v222_v1 = vld.sshfl [vmem:[#allocation1] sm:$0xff pattern:$0x75316420]  ;;  %v223_v2 = vld.sshfl [vmem:[#allocation1 + $0x8] sm:$0xff pattern:$0x75316420] }
  0x17   : > { %224 = vrot.lane.b32.xlu0 %v222_v1, %s655_s21 }
  0x1f   : > { %226 = vrot.lane.b32.xlu0 %v223_v2, %s655_s21 }
  0x89   : > { %v225_v3 = vpop.permute.xlu0 %224 }
  0x8a   : > { %v706_v4 = vsel %vm228_vm0, 0.0, %v225_v3 }
  0x8b   : > { %322 = vrot.lane.b32.xlu1 %v706_v4, %s656_s22  ;;  %v335_v10 = vrot.slane %v706_v4, 4  ;;  %v266_v23 = vsel %vm732_vm8, %v706_v4, 0.0 }
  0x91   : > { %v227_v5 = vpop.permute.xlu0 %226 }
  0x92   : > { %v709_v6 = vsel %vm228_vm0, %v225_v3, %v227_v5  ;;  %v234_v7 = vsel %vm228_vm0, %v227_v5, 0.0 }
  0x93   : > { %300 = vrot.lane.b32.xlu0 %v234_v7, %s657_s23  ;;  %326 = vrot.lane.b32.xlu2 %v234_v7, %s656_s22  ;;  %v612_v8 = vpack.i.bf16 %v709_v6, %v706_v4  ;;  %v336_v9 = vrot.slane %v709_v6, 4  ;;  %v337_v12 = vrot.slane %v234_v7, 4 }
  0x94   : > { %324 = vrot.lane.b32.xlu1 %v709_v6, %s656_s22 }
  0x95   : > { %v637_v11 = vpack.i.bf16 %v336_v9, %v335_v10 }
  0x9b   : > { %287 = vrot.lane.b32.xlu0 %v234_v7, %s658_s24  ;;  %613 = vrot.lane.b32.xlu2 %v612_v8, %s657_s23 }
  0x9c   : > { %618 = vrot.lane.b32.xlu1 %v612_v8, %s659_s25 }
  0xa3   : > { %633 = vrot.lane.b32.xlu0 %v612_v8, %s660_s26  ;;  %313 = vrot.lane.b32.xlu2 %v234_v7, %s659_s25 }
  0xa4   : > { %628 = vrot.lane.b32.xlu1 %v612_v8, %s661_s27 }
  0xab   : > { %623 = vrot.lane.b32.xlu2 %v612_v8, %s658_s24  ;;  %638 = vrot.lane.b32.xlu0 %v637_v11, %s662_s28 }
  0xac   : > { %376 = vrot.lane.b32.xlu1 %v337_v12, %s662_s28 }
  0xb3   : > { %359 = vrot.lane.b32.xlu2 %v234_v7, %s661_s27  ;;  %342 = vrot.lane.b32.xlu0 %v337_v12, %s663_s29 }
  0xb4   : > { %274 = vrot.lane.b32.xlu1 %v234_v7, %s660_s26 }
  0xbb   : > { %643 = vrot.lane.b32.xlu2 %v637_v11, %s663_s29 }
  0xed   : > { %v327_v13 = vpop.permute.xlu2 %326 }
  0xf5   : > { %v614_v14 = vpop.permute.xlu2 %613 }
  0xf6   : > { %v616_v33 = vunpack.i.h.bf16 %v614_v14  ;;  %v615_v34 = vunpack.i.l.bf16 %v614_v14 }
  0xf8   : > { %v303_v37 = vsel %vm302_vm5, %v615_v34, %v616_v33 }
  0xf9   : > { %v307_v45 = vsel %vm720_vm4, %v303_v37, 0.0 }
  0xfa   : > { %v368_v57 = vrot.slane %v307_v45, 4 }
  0xfd   : > { %v323_v16 = vpop.permute.xlu1 %322  ;;  %v314_v18 = vpop.permute.xlu2 %313 }
 0x105   : > { %v301_v22 = vpop.permute.xlu0 %300  ;;  %v624_v28 = vpop.permute.xlu2 %623 }
 0x106   : > { %v325_v24 = vpop.permute.xlu1 %324  ;;  %v626_v39 = vunpack.i.h.bf16 %v624_v28  ;;  %v625_v40 = vunpack.i.l.bf16 %v624_v28  ;;  %v304_v44 = vsel %vm302_vm5, %v616_v33, %v301_v22 }
 0x107   : > { %v329_v26 = vsel %vm328_vm1, %v323_v16, %v325_v24  ;;  %v330_v27 = vsel %vm328_vm1, %v325_v24, %v327_v13  ;;  %v308_v55 = vsel %vm716_vm2, %v304_v44, 0.0  ;;  %v392_v24 = vld [vmem:[%s799_s1] sm:$0xff] }
 0x108   : > { %v333_v29 = vsel %vm720_vm4, %v329_v26, 0.0  ;;  %v334_v30 = vsel %vm716_vm2, %v330_v27, 0.0  ;;  %v290_v50 = vsel %vm289_vm6, %v625_v40, %v626_v39  ;;  %v369_v9 = vrot.slane %v308_v55, 4 }
 0x109   : > { %587 = vmatpush.msk.msra.mxu0 %vm383_vm3, %v333_v29  ;;  %589 = vmatpush.msk.msra.mxu1 %vm383_vm3, %v334_v30  ;;  %v294_v62 = vsel %vm732_vm8, %v290_v50, 0.0  ;;  %v267_v30 = vsel %vm738_vm9, %v709_v6, 0.0 }
 0x10a   : > { %v351_v16 = vrot.slane %v294_v62, 4 }
 0x10d   : > { %v288_v31 = vpop.permute.xlu0 %287  ;;  %v360_v35 = vpop.permute.xlu2 %359 }
 0x10e   : > { %v619_v32 = vpop.permute.xlu1 %618  ;;  %v291_v10 = vsel %vm289_vm6, %v626_v39, %v288_v31 }
 0x10f   : > { %v621_v41 = vunpack.i.h.bf16 %v619_v32  ;;  %v620_v42 = vunpack.i.l.bf16 %v619_v32  ;;  %v295_v17 = vsel %vm738_vm9, %v291_v10, 0.0 }
 0x110   : > { %v352_v25 = vrot.slane %v295_v17, 4 }
 0x111   : > { %v316_v49 = vsel %vm315_vm7, %v620_v42, %v621_v41  ;;  %v317_v54 = vsel %vm315_vm7, %v621_v41, %v314_v18 }
 0x112   : > { %v320_v61 = vsel %vm732_vm8, %v316_v49, 0.0  ;;  %v321_v1 = vsel %vm738_vm9, %v317_v54, 0.0 }
 0x115   : > { %v730_v36 = vpop.permute.xlu0 %633  ;;  %v644_v53 = vpop.permute.xlu2 %643 }
 0x116   : > { %v629_v38 = vpop.permute.xlu1 %628  ;;  %v636_v47 = vunpack.i.h.bf16 %v730_v36  ;;  %v635_v48 = vunpack.i.l.bf16 %v730_v36  ;;  %v646_v63 = vunpack.i.h.bf16 %v644_v53  ;;  %v645_v0 = vunpack.i.l.bf16 %v644_v53 }
 0x117   : > { %v631_v51 = vunpack.i.h.bf16 %v629_v38  ;;  %v630_v52 = vunpack.i.l.bf16 %v629_v38 }
 0x118   : > { %v277_v2 = vsel %vm276_vm11, %v635_v48, %v636_v47  ;;  %v345_v18 = vsel %vm344_vm13, %v645_v0, %v646_v63 }
 0x119   : > { %v362_v7 = vsel %vm361_vm10, %v630_v52, %v631_v51  ;;  %v363_v8 = vsel %vm361_vm10, %v631_v51, %v360_v35  ;;  %v281_v13 = vsel %vm720_vm4, %v277_v2, 0.0  ;;  %v384_v27 = vsel %vm383_vm3, %v266_v23, %v345_v18 }
 0x11a   : > { %v388_v14 = vsel %vm383_vm3, %v362_v7, %v368_v57  ;;  %v389_v15 = vsel %vm383_vm3, %v363_v8, %v369_v9  ;;  %v386_v20 = vsel %vm383_vm3, %v281_v13, %v351_v16 }
 0x11d   : > { %v639_v56 = vpop.permute.xlu0 %638 }
 0x11e   : > { %v377_v58 = vpop.permute.xlu1 %376  ;;  %v641_v59 = vunpack.i.h.bf16 %v639_v56  ;;  %v640_v60 = vunpack.i.l.bf16 %v639_v56 }
 0x120   : > { %v379_v3 = vsel %vm378_vm12, %v640_v60, %v641_v59  ;;  %v380_v5 = vsel %vm378_vm12, %v641_v59, %v377_v58 }
 0x121   : > { %v390_v11 = vsel %vm383_vm3, %v320_v61, %v379_v3  ;;  %v391_v12 = vsel %vm383_vm3, %v321_v1, %v380_v5 }
 0x122   : > { %415 = vmatpush.msra.mxu0 %v390_v11  ;;  %435 = vmatpush.msra.mxu1 %v391_v12 }
 0x124   : > { %416 = vmatpush.msra.mxu0 %v388_v14  ;;  %436 = vmatpush.msra.mxu1 %v389_v15 }
 0x125   : > { %v343_v19 = vpop.permute.xlu0 %342 }
 0x126   : > { %v275_v22 = vpop.permute.xlu1 %274  ;;  %417 = vmatpush.msra.mxu0 %v386_v20  ;;  %v346_v28 = vsel %vm344_vm13, %v646_v63, %v343_v19 }
 0x127   : > { %v278_v26 = vsel %vm276_vm11, %v636_v47, %v275_v22  ;;  %v385_v31 = vsel %vm383_vm3, %v267_v30, %v346_v28 }
 0x128   : > { %418 = vmatpush.msra.mxu0 %v384_v27  ;;  %v282_v29 = vsel %vm716_vm2, %v278_v26, 0.0 }
 0x129   : > { %v387_v4 = vsel %vm383_vm3, %v282_v29, %v352_v25  ;;  %588 = vmatmul.msk.f32.vlgmr.msra.gmra.mxu0 %vm393_vm14, %v392_v24 }
 0x12a   : > { %437 = vmatpush.msra.mxu1 %v387_v4 }
 0x12c   : > { %438 = vmatpush.msra.mxu1 %v385_v31 }
 0x12d   : > { %590 = vmatmul.msk.f32.vlgmr.msra.gmra.mxu1 %vm393_vm14, %v392_v24 }
 0x1a6   : > { %v420_v21 = vpop.f32.mrf.mxu0 }
 0x1a7   : > { %443 = vst [vmem:[%s210_s9] sm:$0xff] %v420_v21 }
 0x1aa   : > { %v440_v32 = vpop.f32.mrf.mxu1 }
 0x1ab   : > { %444 = vst [vmem:[%s210_s9 + $0x8] sm:$0xff] %v440_v32  ;;  %v445_v33 = vadd.f32 %v440_v32, %v420_v21 }
 0x1ad   : > { %446 = vadd.xlane.f32.xlu1 %v445_v33 }
 0x220   : > { %v447_v6 = vpop.xlane.xlu1 %446 }
 0x221   : > { %v448_v34 = vmul.f32 0.00390625, %v447_v6  ;;  %452 = vst.msk [vmem:[%s214_s12] sm:$0xff] %vm451_vm15, %v447_v6 }
 0x223   : > { %v449_v35 = vsub.f32 %v420_v21, %v448_v34  ;;  %v450_v36 = vsub.f32 %v440_v32, %v448_v34 }
 0x225   : > { %v453_v37 = vmul.f32 %v449_v35, %v449_v35  ;;  %v454_v38 = vmul.f32 %v450_v36, %v450_v36 }
 0x227   : > { %v455_v39 = vadd.f32 %v454_v38, %v453_v37 }
 0x229   : > { %456 = vadd.xlane.f32.xlu2 %v455_v39 }
 0x29c   : > { %v457_v40 = vpop.xlane.xlu2 %456 }
 0x29d   : > { %458 = vst.msk [vmem:[%s218_s16] sm:$0xff] %vm451_vm15, %v457_v40 }
 0x29e PF: > { %s15_s15 = sadd.s32 1, %s653_s15  }
 0x29f   : > { %p12_p4 = scmp.ge.s32.totalorder %s15_s15, 4  }
 0x2a1   :  { %14 = sbr.rel (!%p12_p4) target bundleno = 1 (0x1), region = 82 }

</bundles_post_ra>
